<compile_context>
chip_gen: v6e
topology: v6e:2x2x1
jax: 0.10.0
libtpu: 0.0.40
codegen_flags: <defaults>
</compile_context>

<pallas_src>
import functools

import jax
import jax.numpy as jnp
from jax.experimental import pallas as pl
from jax.experimental.pallas import tpu as pltpu


def _round_up(x, m):
    return ((x + m - 1) // m) * m


def _dropout(h, u, p):
    """Matches torch dropout_layer: mask = (rand > p); mask * h / (1 - p)."""
    if p <= 0.0:
        return h
    if p >= 1.0:
        return jnp.zeros_like(h)
    scale = 1.0 / (1.0 - p)
    return jnp.where(u > p, h * scale, jnp.zeros_like(h))


def _mlp_kernel(x_ref, w1_ref, b1_ref, w2_ref, b2_ref, w3_ref, b3_ref,
                *rest, p1, p2, training):
    if training:
        u1_ref, u2_ref, out_ref = rest
    else:
        (out_ref,) = rest

    # bf16 operands into the MXU, f32 accumulation.
    x = x_ref[...].astype(jnp.bfloat16)

    # ---- lin1 + ReLU (+ dropout1) -------------------------------------------
    h1 = jnp.dot(x, w1_ref[...], preferred_element_type=jnp.float32) + b1_ref[...]
    h1 = jnp.maximum(h1, 0.0)
    if training:
        h1 = _dropout(h1, u1_ref[...], p1)

    # ---- lin2 + ReLU (+ dropout2) -------------------------------------------
    h2 = jnp.dot(h1.astype(jnp.bfloat16), w2_ref[...],
                 preferred_element_type=jnp.float32) + b2_ref[...]
    h2 = jnp.maximum(h2, 0.0)
    if training:
        h2 = _dropout(h2, u2_ref[...], p2)

    # ---- lin3 (lane-dense padded output) ------------------------------------
    out = jnp.dot(h2.astype(jnp.bfloat16), w3_ref[...],
                  preferred_element_type=jnp.float32) + b3_ref[...]
    out_ref[...] = out.astype(out_ref.dtype)


def net_forward(x, params, *, p1, p2, seed=0, training=True, tile_m=512):
    """Pallas forward pass of Net.

    x: any shape; flattened to (-1, num_inputs) like the torch module.
    params: dict with w1 (Din,H1), b1 (1,H1), w2 (H1,H2), b2 (1,H2),
            w3 (H2,Dout), b3 (1,Dout), float32.
    """
    w1, b1 = params["w1"], params["b1"]
    w2, b2 = params["w2"], params["b2"]
    w3, b3 = params["w3"], params["b3"]

    num_inputs = w1.shape[0]
    h1_dim = w1.shape[1]
    h2_dim = w2.shape[1]
    num_outputs = w3.shape[1]

    x2 = x.reshape(-1, num_inputs).astype(jnp.float32)
    rows = x2.shape[0]

    # Row tiling: pad rows to a multiple of the tile (sublane-aligned).
    tm = min(int(tile_m), _round_up(rows, 8))
    rows_p = _round_up(rows, tm)
    if rows_p != rows:
        x2 = jnp.pad(x2, ((0, rows_p - rows), (0, 0)))

    # Lane-dense output: pad the last matmul's N dimension to a multiple of 128.
    n_pad = _round_up(num_outputs, 128)
    w3p, b3p = w3, b3
    if n_pad != num_outputs:
        w3p = jnp.pad(w3, ((0, 0), (0, n_pad - num_outputs)))
        b3p = jnp.pad(b3, ((0, 0), (0, n_pad - num_outputs)))

    # bf16 weights (MXU inputs), f32 biases (added to the f32 accumulator).
    w1b = w1.astype(jnp.bfloat16)
    w2b = w2.astype(jnp.bfloat16)
    w3b = w3p.astype(jnp.bfloat16)
    b1f = b1.astype(jnp.float32)
    b2f = b2.astype(jnp.float32)
    b3f = b3p.astype(jnp.float32)

    grid = (rows_p // tm,)

    def row_spec(d):
        return pl.BlockSpec((tm, d), lambda i: (i, 0))

    def bcast_spec(shape):
        return pl.BlockSpec(shape, lambda i: (0, 0))

    in_specs = [
        row_spec(num_inputs),
        bcast_spec(w1b.shape), bcast_spec(b1f.shape),
        bcast_spec(w2b.shape), bcast_spec(b2f.shape),
        bcast_spec(w3b.shape), bcast_spec(b3f.shape),
    ]
    args = [x2, w1b, b1f, w2b, b2f, w3b, b3f]

    if training:
        # Host-side uniforms; each row tile consumes its own slice so every
        # grid step sees independent dropout masks.
        k1, k2 = jax.random.split(jax.random.PRNGKey(seed))
        u1 = jax.random.uniform(k1, (rows_p, h1_dim), dtype=jnp.float32)
        u2 = jax.random.uniform(k2, (rows_p, h2_dim), dtype=jnp.float32)
        in_specs += [row_spec(h1_dim), row_spec(h2_dim)]
        args += [u1, u2]

    kernel = functools.partial(
        _mlp_kernel, p1=float(p1), p2=float(p2), training=bool(training))

    out = pl.pallas_call(
        kernel,
        grid=grid,
        in_specs=in_specs,
        out_specs=row_spec(n_pad),
        out_shape=jax.ShapeDtypeStruct((rows_p, n_pad), jnp.float32),
        compiler_params=pltpu.CompilerParams(
            dimension_semantics=("parallel",)),
    )(*args)

    return out[:rows, :num_outputs]


def init_params(key, num_inputs, num_outputs, num_hiddens1, num_hiddens2):
    """Deterministic parameter init (torch-Linear-like uniform fan-in bounds)."""
    ks = jax.random.split(key, 6)

    def lin(kw, kb, fan_in, fan_out):
        bound = 1.0 / jnp.sqrt(fan_in)
        w = jax.random.uniform(kw, (fan_in, fan_out), jnp.float32, -bound, bound)
        b = jax.random.uniform(kb, (1, fan_out), jnp.float32, -bound, bound)
        return w, b

    w1, b1 = lin(ks[0], ks[1], num_inputs, num_hiddens1)
    w2, b2 = lin(ks[2], ks[3], num_hiddens1, num_hiddens2)
    w3, b3 = lin(ks[4], ks[5], num_hiddens2, num_outputs)
    return {"w1": w1, "b1": b1, "w2": w2, "b2": b2, "w3": w3, "b3": b3}


if __name__ == "__main__":
    # Image-like NCHW input, flattened inside the forward just like the module.
    B, C, H, W = 8, 1, 16, 16            # -> num_inputs = 256
    num_inputs = C * H * W
    num_hiddens1 = 128
    num_hiddens2 = 128
    num_outputs = 16
    drop1, drop2 = 0.2, 0.5

    key = jax.random.PRNGKey(0)
    kx, kp = jax.random.split(key)
    x = jax.random.normal(kx, (B, C, H, W), dtype=jnp.float32)
    params = init_params(kp, num_inputs, num_outputs, num_hiddens1, num_hiddens2)

    out = net_forward(x, params, p1=drop1, p2=drop2, seed=0, training=True)
    jax.block_until_ready(out)
    assert out.shape == (B, num_outputs), out.shape

    # Eval mode (no dropout path, no RNG inputs).
    out_eval = net_forward(x, params, p1=drop1, p2=drop2, seed=0, training=False)
    jax.block_until_ready(out_eval)
    assert out_eval.shape == (B, num_outputs), out_eval.shape

    print("KERNEL_OK")
</pallas_src>

<mosaic_0001>
module attributes {stable_mosaic.version = 11 : i64} {
  func.func @_mlp_kernel(%arg0: i32, %arg1: memref<8x256xf32, #tpu.memory_space<vmem>>, %arg2: memref<256x128xbf16, #tpu.memory_space<vmem>>, %arg3: memref<1x128xf32, #tpu.memory_space<vmem>>, %arg4: memref<128x128xbf16, #tpu.memory_space<vmem>>, %arg5: memref<1x128xf32, #tpu.memory_space<vmem>>, %arg6: memref<128x128xbf16, #tpu.memory_space<vmem>>, %arg7: memref<1x128xf32, #tpu.memory_space<vmem>>, %arg8: memref<8x128xf32, #tpu.memory_space<vmem>>, %arg9: memref<8x128xf32, #tpu.memory_space<vmem>>, %arg10: memref<8x128xf32, #tpu.memory_space<vmem>>) attributes {dimension_semantics = [#tpu.dimension_semantics<parallel>], iteration_bounds = array<i64: 1>, scalar_prefetch = 0 : i64, scratch_operands = 0 : i64, tpu.core_type = #tpu.core_type<tc>, window_params = [{transform_indices = @transform_0, window_bounds = array<i64: 8, 256>}, {pipeline_mode = #tpu.pipeline_mode<synchronous>, transform_indices = @transform_1, window_bounds = array<i64: 256, 128>}, {pipeline_mode = #tpu.pipeline_mode<synchronous>, transform_indices = @transform_2, window_bounds = array<i64: 1, 128>}, {pipeline_mode = #tpu.pipeline_mode<synchronous>, transform_indices = @transform_3, window_bounds = array<i64: 128, 128>}, {pipeline_mode = #tpu.pipeline_mode<synchronous>, transform_indices = @transform_4, window_bounds = array<i64: 1, 128>}, {pipeline_mode = #tpu.pipeline_mode<synchronous>, transform_indices = @transform_5, window_bounds = array<i64: 128, 128>}, {pipeline_mode = #tpu.pipeline_mode<synchronous>, transform_indices = @transform_6, window_bounds = array<i64: 1, 128>}, {transform_indices = @transform_7, window_bounds = array<i64: 8, 128>}, {transform_indices = @transform_8, window_bounds = array<i64: 8, 128>}, {transform_indices = @transform_9, window_bounds = array<i64: 8, 128>}]} {
    %c0 = arith.constant 0 : index
    %c0_0 = arith.constant 0 : index
    %0 = vector.load %arg1[%c0, %c0_0] : memref<8x256xf32, #tpu.memory_space<vmem>>, vector<8x256xf32>
    %1 = arith.truncf %0 : vector<8x256xf32> to vector<8x256xbf16>
    %c0_1 = arith.constant 0 : index
    %c0_2 = arith.constant 0 : index
    %2 = vector.load %arg2[%c0_1, %c0_2] : memref<256x128xbf16, #tpu.memory_space<vmem>>, vector<256x128xbf16>
    %cst = arith.constant dense<0.000000e+00> : vector<8x128xf32>
    %3 = tpu.matmul %1, %2, %cst {dimension_numbers = #tpu.dot_dimension_numbers<[1], [0], [0], [1], [0, 0, 1, 1], [], []>} : vector<8x256xbf16>, vector<256x128xbf16>, vector<8x128xf32> -> vector<8x128xf32>
    %c0_3 = arith.constant 0 : index
    %c0_4 = arith.constant 0 : index
    %4 = vector.load %arg3[%c0_3, %c0_4] : memref<1x128xf32, #tpu.memory_space<vmem>>, vector<1x128xf32>
    %5 = vector.broadcast %4 : vector<1x128xf32> to vector<8x128xf32>
    %6 = arith.addf %3, %5 : vector<8x128xf32>
    %cst_5 = arith.constant 0.000000e+00 : f32
    %7 = vector.broadcast %cst_5 : f32 to vector<8x128xf32>
    %8 = arith.maximumf %6, %7 : vector<8x128xf32>
    %c0_6 = arith.constant 0 : index
    %c0_7 = arith.constant 0 : index
    %9 = vector.load %arg8[%c0_6, %c0_7] : memref<8x128xf32, #tpu.memory_space<vmem>>, vector<8x128xf32>
    %cst_8 = arith.constant 2.000000e-01 : f32
    %10 = vector.broadcast %cst_8 : f32 to vector<8x128xf32>
    %11 = arith.cmpf ogt, %9, %10 : vector<8x128xf32>
    %cst_9 = arith.constant 1.250000e+00 : f32
    %12 = vector.broadcast %cst_9 : f32 to vector<8x128xf32>
    %13 = arith.mulf %8, %12 : vector<8x128xf32>
    %cst_10 = arith.constant 0.000000e+00 : f32
    %14 = vector.broadcast %cst_10 : f32 to vector<8x128xf32>
    %15 = arith.select %11, %13, %14 : vector<8x128xi1>, vector<8x128xf32>
    %16 = arith.truncf %15 : vector<8x128xf32> to vector<8x128xbf16>
    %c0_11 = arith.constant 0 : index
    %c0_12 = arith.constant 0 : index
    %17 = vector.load %arg4[%c0_11, %c0_12] : memref<128x128xbf16, #tpu.memory_space<vmem>>, vector<128x128xbf16>
    %cst_13 = arith.constant dense<0.000000e+00> : vector<8x128xf32>
    %18 = tpu.matmul %16, %17, %cst_13 {dimension_numbers = #tpu.dot_dimension_numbers<[1], [0], [0], [1], [0, 0, 1, 1], [], []>} : vector<8x128xbf16>, vector<128x128xbf16>, vector<8x128xf32> -> vector<8x128xf32>
    %c0_14 = arith.constant 0 : index
    %c0_15 = arith.constant 0 : index
    %19 = vector.load %arg5[%c0_14, %c0_15] : memref<1x128xf32, #tpu.memory_space<vmem>>, vector<1x128xf32>
    %20 = vector.broadcast %19 : vector<1x128xf32> to vector<8x128xf32>
    %21 = arith.addf %18, %20 : vector<8x128xf32>
    %cst_16 = arith.constant 0.000000e+00 : f32
    %22 = vector.broadcast %cst_16 : f32 to vector<8x128xf32>
    %23 = arith.maximumf %21, %22 : vector<8x128xf32>
    %c0_17 = arith.constant 0 : index
    %c0_18 = arith.constant 0 : index
    %24 = vector.load %arg9[%c0_17, %c0_18] : memref<8x128xf32, #tpu.memory_space<vmem>>, vector<8x128xf32>
    %cst_19 = arith.constant 5.000000e-01 : f32
    %25 = vector.broadcast %cst_19 : f32 to vector<8x128xf32>
    %26 = arith.cmpf ogt, %24, %25 : vector<8x128xf32>
    %cst_20 = arith.constant 2.000000e+00 : f32
    %27 = vector.broadcast %cst_20 : f32 to vector<8x128xf32>
    %28 = arith.mulf %23, %27 : vector<8x128xf32>
    %cst_21 = arith.constant 0.000000e+00 : f32
    %29 = vector.broadcast %cst_21 : f32 to vector<8x128xf32>
    %30 = arith.select %26, %28, %29 : vector<8x128xi1>, vector<8x128xf32>
    %31 = arith.truncf %30 : vector<8x128xf32> to vector<8x128xbf16>
    %c0_22 = arith.constant 0 : index
    %c0_23 = arith.constant 0 : index
    %32 = vector.load %arg6[%c0_22, %c0_23] : memref<128x128xbf16, #tpu.memory_space<vmem>>, vector<128x128xbf16>
    %cst_24 = arith.constant dense<0.000000e+00> : vector<8x128xf32>
    %33 = tpu.matmul %31, %32, %cst_24 {dimension_numbers = #tpu.dot_dimension_numbers<[1], [0], [0], [1], [0, 0, 1, 1], [], []>} : vector<8x128xbf16>, vector<128x128xbf16>, vector<8x128xf32> -> vector<8x128xf32>
    %c0_25 = arith.constant 0 : index
    %c0_26 = arith.constant 0 : index
    %34 = vector.load %arg7[%c0_25, %c0_26] : memref<1x128xf32, #tpu.memory_space<vmem>>, vector<1x128xf32>
    %35 = vector.broadcast %34 : vector<1x128xf32> to vector<8x128xf32>
    %36 = arith.addf %33, %35 : vector<8x128xf32>
    %c0_27 = arith.constant 0 : index
    %c0_28 = arith.constant 0 : index
    %37 = vector.load %arg10[%c0_27, %c0_28] : memref<8x128xf32, #tpu.memory_space<vmem>>, vector<8x128xf32>
    tpu.vector_store %arg10[%c0_27, %c0_28], %36 {strides = array<i32>} : memref<8x128xf32, #tpu.memory_space<vmem>>, vector<8x128xf32>,
    return
  }
  func.func @transform_0(%arg0: i32) -> (i32, i32) {
    %c0_i32 = arith.constant 0 : i32
    %c0_i32_0 = arith.constant 0 : i32
    return %arg0, %c0_i32 : i32, i32
  }
  func.func @transform_1(%arg0: i32) -> (i32, i32) {
    %c0_i32 = arith.constant 0 : i32
    %c0_i32_0 = arith.constant 0 : i32
    %c0_i32_1 = arith.constant 0 : i32
    return %c0_i32, %c0_i32_0 : i32, i32
  }
  func.func @transform_2(%arg0: i32) -> (i32, i32) {
    %c0_i32 = arith.constant 0 : i32
    %c0_i32_0 = arith.constant 0 : i32
    %c0_i32_1 = arith.constant 0 : i32
    return %c0_i32, %c0_i32_0 : i32, i32
  }
  func.func @transform_3(%arg0: i32) -> (i32, i32) {
    %c0_i32 = arith.constant 0 : i32
    %c0_i32_0 = arith.constant 0 : i32
    %c0_i32_1 = arith.constant 0 : i32
    return %c0_i32, %c0_i32_0 : i32, i32
  }
  func.func @transform_4(%arg0: i32) -> (i32, i32) {
    %c0_i32 = arith.constant 0 : i32
    %c0_i32_0 = arith.constant 0 : i32
    %c0_i32_1 = arith.constant 0 : i32
    return %c0_i32, %c0_i32_0 : i32, i32
  }
  func.func @transform_5(%arg0: i32) -> (i32, i32) {
    %c0_i32 = arith.constant 0 : i32
    %c0_i32_0 = arith.constant 0 : i32
    %c0_i32_1 = arith.constant 0 : i32
    return %c0_i32, %c0_i32_0 : i32, i32
  }
  func.func @transform_6(%arg0: i32) -> (i32, i32) {
    %c0_i32 = arith.constant 0 : i32
    %c0_i32_0 = arith.constant 0 : i32
    %c0_i32_1 = arith.constant 0 : i32
    return %c0_i32, %c0_i32_0 : i32, i32
  }
  func.func @transform_7(%arg0: i32) -> (i32, i32) {
    %c0_i32 = arith.constant 0 : i32
    %c0_i32_0 = arith.constant 0 : i32
    return %arg0, %c0_i32 : i32, i32
  }
  func.func @transform_8(%arg0: i32) -> (i32, i32) {
    %c0_i32 = arith.constant 0 : i32
    %c0_i32_0 = arith.constant 0 : i32
    return %arg0, %c0_i32 : i32, i32
  }
  func.func @transform_9(%arg0: i32) -> (i32, i32) {
    %c0_i32 = arith.constant 0 : i32
    %c0_i32_0 = arith.constant 0 : i32
    return %arg0, %c0_i32 : i32, i32
  }
}

</mosaic_0001>

<bundles_post_ra>
// kernel: tpu_custom_call.1
= control target key start
LH: loop header
LB: loop body
LE: loop exit
PB: predicated region body
PF: predicated region fallthrough
CT: control target
= control target key end

     0   :  { %14 = vsyncpa [#allocation3], 0  ;;  %s937_s0 = inlined_call_operand.hbm [shape: f32[8,256], index: 0, kind: input, shape index: {}]   ;;  %s938_s1 = inlined_call_operand.hbm [shape: bf16[256,128], index: 1, kind: input, shape index: {}]   ;;  %s939_s2 = inlined_call_operand.vmem [shape: f32[1,128], index: 2, kind: input, shape index: {}]   ;;  %s940_s3 = inlined_call_operand.hbm [shape: bf16[128,128], index: 3, kind: input, shape index: {}]   ;;  %s941_s4 = inlined_call_operand.vmem [shape: f32[1,128], index: 4, kind: input, shape index: {}]   ;;  %s942_s5 = inlined_call_operand.hbm [shape: bf16[128,128], index: 5, kind: input, shape index: {}]   ;;  %s943_s6 = inlined_call_operand.vmem [shape: f32[1,128], index: 6, kind: input, shape index: {}]   ;;  %s944_s7 = inlined_call_operand.vmem [shape: f32[8,128], index: 7, kind: input, shape index: {}]   ;;  %s945_s8 = inlined_call_operand.hbm [shape: f32[8,128], index: 8, kind: input, shape index: {}]   ;;  %s946_s9 = inlined_call_operand.hbm [shape: f32[8,128], index: 9, kind: output, shape index: {}]  }
   0x1   :  { %15 = vsyncpa [#allocation6], 0 }
   0x2   :  { %16 = vsyncpa [#allocation9], 0 }
   0x3   :  { %17 = vsyncpa [#allocation4], 0  ;;  %s820_s30 = smov [#allocation5]  }
   0x4   :  { %s33_s10 = sshll.u32 %s820_s30, 4  ;;  %s34_s10 = int_to_ptr.vmem [resolvable:$true] %s33_s10 }
   0x5   :  { %s700_s11 = scalar_lea.vmem %s34_s10, 2048  ;;  %p705_p1 = scmp.lt.s32.totalorder %s34_s10, %s34_s10 }
   0x6   :  { %p701_p0 = scmp.ne.s32.totalorder %s34_s10, %s700_s11  ;;  %p706_p2 = scmp.lt.s32.totalorder %s700_s11, %s700_s11 }
   0x8   :  { %p707_p3 = por %p706_p2, %p705_p1 }
   0xa   :  { %p708_p4 = pnand %p707_p3, %p701_p0 }
   0xc   :  { %711 = shalt.err (!%p708_p4)
}
   0xd   :  { %s821_s12 = smov 64   ;;  %s822_s13 = smov 4  }
   0xe   :  { %39 = dma.hbm_to_vmem [thread:$0]  %s938_s1, 2048, %s34_s10, [#allocation6], %s821_s12, %s821_s12, %s822_s13  }
   0xf   :  { %s823_s16 = smov [#allocation8]   ;;  %s824_s18 = smov [#allocation2]  }
  0x10   :  { %s61_s17 = sshll.u32 %s823_s16, 4  ;;  %s24_s19 = sshll.u32 %s824_s18, 4  ;;  %s62_s17 = int_to_ptr.vmem [resolvable:$true] %s61_s17  ;;  %s25_s19 = int_to_ptr.vmem [resolvable:$true] %s24_s19 }
  0x11   :  { %s720_s20 = scalar_lea.vmem %s62_s17, 1024  ;;  %p725_p6 = scmp.lt.s32.totalorder %s62_s17, %s62_s17 }
  0x12   :  { %p721_p5 = scmp.ne.s32.totalorder %s62_s17, %s720_s20  ;;  %p726_p7 = scmp.lt.s32.totalorder %s720_s20, %s720_s20 }
  0x14   :  { %p727_p8 = por %p726_p7, %p725_p6 }
  0x16   :  { %p728_p9 = pnand %p727_p8, %p721_p5 }
  0x18   :  { %731 = shalt.err (!%p728_p9)
}
  0x19   :  { %67 = dma.hbm_to_vmem [thread:$0]  %s942_s5, 1024, %s62_s17, [#allocation9], %s821_s12, %s821_s12, %s822_s13  }
  0x1a   :  { %s740_s1 = scalar_lea.vmem %s25_s19, 256  ;;  %p745_p11 = scmp.lt.s32.totalorder %s25_s19, %s25_s19 }
  0x1b   :  { %p741_p10 = scmp.ne.s32.totalorder %s25_s19, %s740_s1  ;;  %p746_p12 = scmp.lt.s32.totalorder %s740_s1, %s740_s1 }
  0x1d   :  { %p747_p13 = por %p746_p12, %p745_p11 }
  0x1f   :  { %p748_p0 = pnand %p747_p13, %p741_p10 }
  0x21   :  { %751 = shalt.err (!%p748_p0)
}
  0x22   :  { %27 = dma.hbm_to_vmem [thread:$0]  %s937_s0, 256, %s25_s19, [#allocation3]  }
  0x23   :  { %s825_s25 = smov [#allocation7]   ;;  %s826_s27 = smov [#allocation10]  }
  0x24   :  { %s47_s26 = sshll.u32 %s825_s25, 4  ;;  %s78_s28 = sshll.u32 %s826_s27, 4  ;;  %s48_s26 = int_to_ptr.vmem [resolvable:$true] %s47_s26  ;;  %s79_s28 = int_to_ptr.vmem [resolvable:$true] %s78_s28 }
  0x25   :  { %s760_s29 = scalar_lea.vmem %s48_s26, 1024  ;;  %p765_p2 = scmp.lt.s32.totalorder %s48_s26, %s48_s26 }
  0x26   :  { %p761_p1 = scmp.ne.s32.totalorder %s48_s26, %s760_s29  ;;  %p766_p3 = scmp.lt.s32.totalorder %s760_s29, %s760_s29 }
  0x28   :  { %p767_p4 = por %p766_p3, %p765_p2 }
  0x2a   :  { %p768_p5 = pnand %p767_p4, %p761_p1 }
  0x2c   :  { %771 = shalt.err (!%p768_p5)
}
  0x2d   :  { %53 = dma.hbm_to_vmem [thread:$0]  %s940_s3, 1024, %s48_s26, [#allocation6], %s821_s12, %s821_s12, %s822_s13  }
  0x2e   :  { %s780_s0 = scalar_lea.vmem %s79_s28, 128  ;;  %p785_p7 = scmp.lt.s32.totalorder %s79_s28, %s79_s28 }
  0x2f   :  { %p781_p6 = scmp.ne.s32.totalorder %s79_s28, %s780_s0  ;;  %p786_p8 = scmp.lt.s32.totalorder %s780_s0, %s780_s0 }
  0x31   :  { %p787_p9 = por %p786_p8, %p785_p7 }
  0x33   :  { %p788_p10 = pnand %p787_p9, %p781_p6 }
  0x35   :  { %791 = shalt.err (!%p788_p10)
}
  0x36   :  { %81 = dma.hbm_to_vmem [thread:$0]  %s945_s8, 128, %s79_s28, [#allocation9]  }
  0x37   :  { %812 = dma.done.wait [#allocation3], 256  }
  0x38   :  { %813 = vsyncadd [#allocation3], 4294967040 }
  0x39   :  { %814 = dma.done.wait [#allocation6], 3072  }
  0x3a   :  { %815 = vsyncadd [#allocation6], 4294964224 }
  0x3b   :  { %816 = dma.done.wait [#allocation9], 1152  }
  0x3c   :  { %817 = vsyncadd [#allocation9], 4294966144  ;;  %v827_v0 = vmov 0.0   ;;  %v660_v1 = vld [vmem:[#allocation5 + $0x78] sm:$0xff]   ;;  %v662_v3 = vld [vmem:[#allocation5 + $0x70] sm:$0xff]   ;;  %vm828_vm0 = vmmov 0  }
  0x3d   :  { %610 = vmatprep.subr.bf16.mxu1 %v827_v0  ;;  %v661_v2 = vld [vmem:[#allocation5 + $0x38] sm:$0xff]   ;;  %570 = vmatprep.subr.bf16.mxu0 %v660_v1  ;;  %v663_v4 = vld [vmem:[#allocation5 + $0x30] sm:$0xff]   ;;  %v664_v5 = vld [vmem:[#allocation5 + $0x68] sm:$0xff]   ;;  %s829_s16 = smov [#allocation11]  }
  0x3e   :  { %571 = vmatpush3.bf16.msra.mxu0 %v661_v2  ;;  %v665_v6 = vld [vmem:[#allocation5 + $0x28] sm:$0xff]   ;;  %v666_v7 = vld [vmem:[#allocation5 + $0x60] sm:$0xff]   ;;  %v668_v9 = vld [vmem:[#allocation5 + $0x58] sm:$0xff]   ;;  %626 = vmatprep.mubr.msk.bf16.mxu1 %vm828_vm0, %v827_v0  ;;  %s518_s17 = sshll.u32 %s829_s16, 4  ;;  %s519_s17 = int_to_ptr.vmem [resolvable:$true] %s518_s17 }
  0x3f   :  { %572 = vmatprep.subr.bf16.mxu0 %v662_v3  ;;  %v667_v8 = vld [vmem:[#allocation5 + $0x20] sm:$0xff]   ;;  %v669_v10 = vld [vmem:[#allocation5 + $0x18] sm:$0xff]   ;;  %v670_v11 = vld [vmem:[#allocation5 + $0x50] sm:$0xff]   ;;  %p797_p12 = scmp.lt.s32.totalorder %s519_s17, %s519_s17 }
  0x40   :  { %v99_v12 = vld [vmem:[#allocation2 + $0x8] sm:$0xff]  ;;  %v671_v15 = vld [vmem:[#allocation5 + $0x10] sm:$0xff]   ;;  %v672_v16 = vld [vmem:[#allocation5 + $0x48] sm:$0xff]  }
  0x41   :  { %v101_v13 = vpack.c.bf16 %v99_v12, %v99_v12  ;;  %v676_v14 = vld [vmem:[#allocation7 + $0x38] sm:$0xff]   ;;  %v677_v17 = vld [vmem:[#allocation7 + $0x30] sm:$0xff]   ;;  %v673_v18 = vld [vmem:[#allocation5 + $0x8] sm:$0xff]  }
  0x42   :  { %573 = vmatpush3.bf16.msra.mxu0 %v663_v4  ;;  %611 = vmatpush3.bf16.msra.mxu1 %v676_v14  ;;  %v674_v19 = vld [vmem:[#allocation5 + $0x40] sm:$0xff]   ;;  %v678_v20 = vld [vmem:[#allocation7 + $0x28] sm:$0xff]   ;;  %v98_v22 = vld [vmem:[#allocation2] sm:$0xff] }
  0x43   :  { %574 = vmatprep.subr.bf16.mxu0 %v664_v5  ;;  %269 = vmatprep.mubr.bf16.mxu0 %v101_v13  ;;  %v675_v21 = vld [vmem:[#allocation5] sm:$0xff]   ;;  %v100_v24 = vpack.c.bf16 %v98_v22, %v98_v22  ;;  %v680_v25 = vld [vmem:[#allocation7 + $0x18] sm:$0xff]   ;;  %v681_v26 = vld [vmem:[#allocation7 + $0x10] sm:$0xff]  }
  0x44   :  { %612 = vmatprep.subr.bf16.mxu1 %v827_v0  ;;  %v679_v23 = vld [vmem:[#allocation7 + $0x20] sm:$0xff]   ;;  %v682_v27 = vld [vmem:[#allocation7 + $0x8] sm:$0xff]   ;;  %v684_v29 = vld [vmem:[#allocation8 + $0x38] sm:$0xff]  }
  0x45   :  { %v683_v28 = vld [vmem:[#allocation7] sm:$0xff]   ;;  %v685_v30 = vld [vmem:[#allocation8 + $0x30] sm:$0xff]   ;;  %v686_v31 = vld [vmem:[#allocation8 + $0x28] sm:$0xff]  }
  0x46   :  { %575 = vmatpush3.bf16.msra.mxu0 %v665_v6  ;;  %613 = vmatpush3.bf16.msra.mxu1 %v677_v17  ;;  %v687_v32 = vld [vmem:[#allocation8 + $0x20] sm:$0xff]   ;;  %v688_v33 = vld [vmem:[#allocation8 + $0x18] sm:$0xff]   ;;  %v689_v34 = vld [vmem:[#allocation8 + $0x10] sm:$0xff]  }
  0x47   :  { %576 = vmatprep.subr.bf16.mxu0 %v666_v7  ;;  %614 = vmatprep.subr.bf16.mxu1 %v827_v0  ;;  %v529_v36 = vld [vmem:[%s939_s2] ss:$0 sm:$0xff]  ;;  %v690_v46 = vld [vmem:[#allocation8 + $0x8] sm:$0xff]   ;;  %v691_v47 = vld [vmem:[#allocation8] sm:$0xff]  }
  0x48   :  { %v278_v40 = vld [vmem:[%s944_s7] sm:$0xff]  ;;  %v395_v50 = vld [vmem:[#allocation10] sm:$0xff] }
  0x49   :  { %vm279_vm1 = vcmp.gt.f32.partialorder %v278_v40, 0.2  ;;  %v546_v48 = vld [vmem:[%s941_s4] ss:$0 sm:$0xff]  ;;  %vm396_vm3 = vcmp.gt.f32.partialorder %v395_v50, 0.5  ;;  %s792_s4 = scalar_lea.vmem %s519_s17, 128 }
  0x4a   :  { %577 = vmatpush3.bf16.msra.mxu0 %v667_v8  ;;  %615 = vmatpush3.bf16.msra.mxu1 %v678_v20  ;;  %vm555_vm2 = vmpackc.low %vm279_vm1, %vm279_vm1  ;;  %v558_v58 = vld [vmem:[%s943_s6] ss:$0 sm:$0xff]  ;;  %p793_p11 = scmp.ne.s32.totalorder %s519_s17, %s792_s4  ;;  %p798_p13 = scmp.lt.s32.totalorder %s792_s4, %s792_s4 }
  0x4b   :  { %578 = vmatprep.subr.bf16.mxu0 %v668_v9  ;;  %616 = vmatprep.subr.bf16.mxu1 %v827_v0  ;;  %vm567_vm4 = vmpackc.low %vm396_vm3, %vm396_vm3 }
  0x4c   :  { %p799_p0 = por %p798_p13, %p797_p12 }
  0x4e   :  { %579 = vmatpush3.bf16.msra.mxu0 %v669_v10  ;;  %617 = vmatpush3.bf16.msra.mxu1 %v679_v23  ;;  %p800_p1 = pnand %p799_p0, %p793_p11 }
  0x4f   :  { %580 = vmatprep.subr.bf16.mxu0 %v670_v11  ;;  %618 = vmatprep.subr.bf16.mxu1 %v827_v0 }
  0x52   :  { %581 = vmatpush3.bf16.msra.mxu0 %v671_v15  ;;  %619 = vmatpush3.bf16.msra.mxu1 %v680_v25 }
  0x53   :  { %582 = vmatprep.subr.bf16.mxu0 %v672_v16  ;;  %620 = vmatprep.subr.bf16.mxu1 %v827_v0 }
  0x56   :  { %583 = vmatpush3.bf16.msra.mxu0 %v673_v18  ;;  %621 = vmatpush3.bf16.msra.mxu1 %v681_v26 }
  0x57   :  { %584 = vmatprep.subr.bf16.mxu0 %v674_v19  ;;  %622 = vmatprep.subr.bf16.mxu1 %v827_v0 }
  0x5a   :  { %585 = vmatpush3.bf16.msra.mxu0 %v675_v21  ;;  %623 = vmatpush3.bf16.msra.mxu1 %v682_v27 }
  0x5b   :  { %630 = vmatprep.subr.bf16.mxu0 %v827_v0  ;;  %624 = vmatprep.subr.bf16.mxu1 %v827_v0 }
  0x5d   :  { %270 = vmatmul.mubr.bf16.vlgmr.msra.gmra.mxu0 %v100_v24 }
  0x5e   :  { %625 = vmatpush3.bf16.msra.mxu1 %v683_v28  ;;  %646 = vmatprep.mubr.msk.bf16.mxu0 %vm828_vm0, %v827_v0 }
  0x5f   :  { %631 = vmatpush3.bf16.msra.mxu0 %v684_v29 }
  0x60   :  { %632 = vmatprep.subr.bf16.mxu0 %v827_v0 }
  0x63   :  { %633 = vmatpush3.bf16.msra.mxu0 %v685_v30 }
  0x64   :  { %634 = vmatprep.subr.bf16.mxu0 %v827_v0 }
  0x67   :  { %635 = vmatpush3.bf16.msra.mxu0 %v686_v31 }
  0x68   :  { %636 = vmatprep.subr.bf16.mxu0 %v827_v0 }
  0x6b   :  { %637 = vmatpush3.bf16.msra.mxu0 %v687_v32 }
  0x6c   :  { %638 = vmatprep.subr.bf16.mxu0 %v827_v0 }
  0x6f   :  { %639 = vmatpush3.bf16.msra.mxu0 %v688_v33 }
  0x70   :  { %640 = vmatprep.subr.bf16.mxu0 %v827_v0 }
  0x73   :  { %641 = vmatpush3.bf16.msra.mxu0 %v689_v34 }
  0x74   :  { %642 = vmatprep.subr.bf16.mxu0 %v827_v0 }
  0x77   :  { %643 = vmatpush3.bf16.msra.mxu0 %v690_v46 }
  0x78   :  { %644 = vmatprep.subr.bf16.mxu0 %v827_v0 }
  0x7b   :  { %645 = vmatpush3.bf16.msra.mxu0 %v691_v47 }
 0x11d   :  { %v586_v35 = vpop.f32.mrf.mxu0 }
 0x11f   :  { %v587_v37 = vpop.f32.mrf.mxu0 }
 0x120   :  { %v588_v38 = vadd.f32 %v587_v37, %v586_v35 }
 0x121   :  { %v589_v39 = vpop.f32.mrf.mxu0 }
 0x122   :  { %v272_v41 = vadd.f32 %v588_v38, %v529_v36 }
 0x123   :  { %v590_v42 = vpop.f32.mrf.mxu0 }
 0x124   :  { %v277_v43 = vmax.f32 %v272_v41, 0.0 }
 0x126   :  { %v280_v44 = vmul.f32 1.25, %v277_v43 }
 0x128   :  { %v556_v45 = vpack.c.bf16 %v280_v44, %v280_v44 }
 0x12a   :  { %627 = vmatmul.mubr.msk.bf16.vlgmr.msra.gmra.mxu1 %vm555_vm2, %v556_v45 }
 0x1ea   :  { %v388_v49 = vpop.f32.mrf.mxu1 }
 0x1eb   :  { %v389_v51 = vadd.f32 %v546_v48, %v388_v49 }
 0x1ec   :  { %v628_v52 = vpop.f32.mrf.mxu1 }
 0x1ed   :  { %v394_v53 = vmax.f32 %v389_v51, 0.0 }
 0x1ee   :  { %v391_v54 = vpop.f32.mrf.mxu1 }
 0x1ef   :  { %v397_v55 = vmul.f32 2.0, %v394_v53 }
 0x1f0   :  { %v629_v56 = vpop.f32.mrf.mxu1 }
 0x1f1   :  { %v568_v57 = vpack.c.bf16 %v397_v55, %v397_v55 }
 0x1f3   :  { %647 = vmatmul.mubr.msk.bf16.vlgmr.msra.gmra.mxu0 %vm567_vm4, %v568_v57 }
 0x2b3   :  { %v505_v59 = vpop.f32.mrf.mxu0 }
 0x2b4   :  { %v506_v60 = vadd.f32 %v558_v58, %v505_v59 }
 0x2b5   :  { %v648_v61 = vpop.f32.mrf.mxu0 }
 0x2b6   :  { %511 = vst [vmem:[#allocation11] sm:$0xff] %v506_v60 }
 0x2b7   :  { %v508_v62 = vpop.f32.mrf.mxu0 }
 0x2b8   :  { %803 = shalt.err (!%p800_p1)
}
 0x2b9   :  { %521 = dma.vmem_to_hbm [thread:$0]  %s519_s17, 128, %s946_s9, [#allocation4]   ;;  %v649_v63 = vpop.f32.mrf.mxu0 }
 0x2ba   :  { %818 = dma.done.wait [#allocation4], 128  }
 0x2bb   :  { %819 = vsyncadd [#allocation4], 4294967168 }
 0x2bc   :  { %525 = vsyncpa [#allocation3], 1 }
 0x2bd   :  { %526 = vsyncpa [#allocation6], 1 }
 0x2be   :  { %527 = vsyncpa [#allocation9], 1 }
 0x2bf   :  { %528 = vsyncpa [#allocation4], 1 }

</bundles_post_ra>
